<compile_context>
chip_gen: v5e
topology: v5e:2x2
jax: 0.10.0
libtpu: 0.0.40
codegen_flags: <defaults>
</compile_context>

<pallas_src>
import functools

import jax
import jax.numpy as jnp
from jax import lax
from jax.experimental import pallas as pl
from jax.experimental.pallas import tpu as pltpu

NUM_CLASSES = 8
FEAT_PER_LAYER = 768            # wav2vec2-base hidden size
D_CAT = 4 * FEAT_PER_LAYER      # 3072 (concat of last 4 transformer layer outputs)
FRAME = 320                     # wav2vec2-base hop length (stand-in framing)
FRAME_PAD = 384                 # 320 padded to 3 lane-tiles for aligned loads


def _round_up(n, m):
    return ((n + m - 1) // m) * m


# --------------------------------------------------------------------------------------
# Streaming attention-pooling kernels (online softmax over the time axis)
# --------------------------------------------------------------------------------------
def pool_frames_kernel(frames_ref, avec_ref, out_ref, m_sc, l_sc, s_sc, *, seq_len, tile_t):
    """Fast path: accumulate softmax-weighted *frames* (width FRAME_PAD); project later."""
    t = pl.program_id(1)

    @pl.when(t == 0)
    def _():
        m_sc[...] = jnp.full_like(m_sc, -jnp.inf)
        l_sc[...] = jnp.zeros_like(l_sc)
        s_sc[...] = jnp.zeros_like(s_sc)

    frames = frames_ref[0]                                                   # (tT, 384) bf16
    # Attention logits with the projection folded through the linear stand-in backbone:
    # (frames @ proj) @ watt == frames @ (proj @ watt) = frames @ a_vec.  Bias cancels in softmax.
    logits = jnp.dot(frames, avec_ref[...], preferred_element_type=jnp.float32)   # (tT, 1) f32
    # Mask rows past the true sequence length (ragged last tile).
    idx = lax.broadcasted_iota(jnp.int32, logits.shape, 0) + t * tile_t
    logits = jnp.where(idx < seq_len, logits, -jnp.inf)

    tile_max = jnp.max(logits, axis=0, keepdims=True)                        # (1, 1)
    m_new = jnp.maximum(m_sc[...], tile_max)
    corr = jnp.exp(m_sc[...] - m_new)
    p = jnp.exp(logits - m_new)                                              # (tT, 1) f32

    l_sc[...] = corr * l_sc[...] + jnp.sum(p, axis=0, keepdims=True)
    weighted = lax.dot_general(p.astype(jnp.bfloat16), frames,
                               (((0,), (0,)), ((), ())),
                               preferred_element_type=jnp.float32)           # (1, 384)
    s_sc[...] = corr * s_sc[...] + weighted
    m_sc[...] = m_new

    @pl.when(t == pl.num_programs(1) - 1)
    def _():
        out_ref[0] = s_sc[...] / l_sc[...]                                   # exact division


def pool_feats_kernel(frames_ref, proj_ref, avec_ref, out_ref, m_sc, l_sc, acc_sc,
                      *, seq_len, tile_t):
    """Unfused path: per-tile frames -> 3072-d features, softmax-weighted feature sum."""
    t = pl.program_id(1)

    @pl.when(t == 0)
    def _():
        m_sc[...] = jnp.full_like(m_sc, -jnp.inf)
        l_sc[...] = jnp.zeros_like(l_sc)
        acc_sc[...] = jnp.zeros_like(acc_sc)

    frames = frames_ref[0]                                                   # (tT, 384) bf16
    feats = jnp.dot(frames, proj_ref[...],
                    preferred_element_type=jnp.float32)                      # (tT, 3072) f32
    logits = jnp.dot(frames, avec_ref[...],
                     preferred_element_type=jnp.float32)                     # (tT, 1), K=384
    idx = lax.broadcasted_iota(jnp.int32, logits.shape, 0) + t * tile_t
    logits = jnp.where(idx < seq_len, logits, -jnp.inf)

    tile_max = jnp.max(logits, axis=0, keepdims=True)
    m_new = jnp.maximum(m_sc[...], tile_max)
    corr = jnp.exp(m_sc[...] - m_new)
    p = jnp.exp(logits - m_new)

    l_sc[...] = corr * l_sc[...] + jnp.sum(p, axis=0, keepdims=True)
    weighted = lax.dot_general(p.astype(jnp.bfloat16), feats.astype(jnp.bfloat16),
                               (((0,), (0,)), ((), ())),
                               preferred_element_type=jnp.float32)           # (1, 3072)
    acc_sc[...] = corr * acc_sc[...] + weighted
    m_sc[...] = m_new

    @pl.when(t == pl.num_programs(1) - 1)
    def _():
        out_ref[0] = acc_sc[...] / l_sc[...]


# --------------------------------------------------------------------------------------
# Batched classifier head (one small pallas_call over the whole batch)
# --------------------------------------------------------------------------------------
def _classifier_mlp(feats_f32, w1_ref, c1_ref, w2_ref, c2_ref, w3_ref, b3_ref, w4_ref, b4_ref):
    # Linear(3072,512)+BatchNorm1d folded, ReLU (Dropout=id)
    h = jnp.dot(feats_f32.astype(jnp.bfloat16), w1_ref[...],
                preferred_element_type=jnp.float32) + c1_ref[...]
    h = jnp.maximum(h, 0.0)
    # Linear(512,256)+BatchNorm1d folded, ReLU (Dropout=id)
    h = jnp.dot(h.astype(jnp.bfloat16), w2_ref[...],
                preferred_element_type=jnp.float32) + c2_ref[...]
    h = jnp.maximum(h, 0.0)
    # Linear(256,128), ReLU (Dropout=id)
    h = jnp.dot(h.astype(jnp.bfloat16), w3_ref[...],
                preferred_element_type=jnp.float32) + b3_ref[...]
    h = jnp.maximum(h, 0.0)
    # Linear(128, num_classes)
    return jnp.dot(h.astype(jnp.bfloat16), w4_ref[...],
                   preferred_element_type=jnp.float32) + b4_ref[...]


def classifier_from_frames_kernel(pooled_ref, proj_ref, w1_ref, c1_ref, w2_ref, c2_ref,
                                  w3_ref, b3_ref, w4_ref, b4_ref, out_ref):
    # pooled frames (B,384) -> pooled features (B,3072) -> MLP, all batched on the MXU.
    feats = jnp.dot(pooled_ref[...].astype(jnp.bfloat16), proj_ref[...],
                    preferred_element_type=jnp.float32)
    out_ref[...] = _classifier_mlp(feats, w1_ref, c1_ref, w2_ref, c2_ref,
                                   w3_ref, b3_ref, w4_ref, b4_ref)


def classifier_kernel(pooled_ref, w1_ref, c1_ref, w2_ref, c2_ref,
                      w3_ref, b3_ref, w4_ref, b4_ref, out_ref):
    out_ref[...] = _classifier_mlp(pooled_ref[...], w1_ref, c1_ref, w2_ref, c2_ref,
                                   w3_ref, b3_ref, w4_ref, b4_ref)


# --------------------------------------------------------------------------------------
# Parameters (stand-in backbone projection + BN-folded classifier) and wrapper
# --------------------------------------------------------------------------------------
def make_params(key, num_classes=NUM_CLASSES):
    ks = jax.random.split(key, 9)

    def lin(k, fan_in, fan_out):
        bound = 1.0 / jnp.sqrt(jnp.float32(fan_in))
        kw, kb = jax.random.split(k)
        w = jax.random.uniform(kw, (fan_in, fan_out), jnp.float32, -bound, bound)
        b = jax.random.uniform(kb, (1, fan_out), jnp.float32, -bound, bound)
        return w, b

    # Stand-in projections replacing the pretrained wav2vec2 backbone outputs; the 4 per-layer
    # projections are concatenated along the output dim.  Rows padded 320 -> 384 with zeros.
    proj = jnp.concatenate(
        [0.02 * jax.random.normal(ks[i], (FRAME, FEAT_PER_LAYER), jnp.float32)
         for i in range(4)], axis=1)                                  # (320, 3072)
    proj = jnp.pad(proj, ((0, FRAME_PAD - FRAME), (0, 0)))            # (384, 3072)

    watt, _batt = lin(ks[4], D_CAT, 1)   # AttentionPooling Linear(3072,1); bias cancels in softmax
    w1, b1 = lin(ks[5], D_CAT, 512)
    w2, b2 = lin(ks[6], 512, 256)
    w3, b3 = lin(ks[7], 256, 128)
    w4, b4 = lin(ks[8], 128, num_classes)

    eps = 1e-5
    def bn_fold(n):
        # PyTorch BatchNorm1d defaults (eval): gamma=1, beta=0, running_mean=0, running_var=1
        gamma = jnp.ones((1, n), jnp.float32)
        beta = jnp.zeros((1, n), jnp.float32)
        mean = jnp.zeros((1, n), jnp.float32)
        var = jnp.ones((1, n), jnp.float32)
        scale = gamma / jnp.sqrt(var + eps)
        shift = beta - mean * scale
        return scale, shift

    s1, sh1 = bn_fold(512)
    s2, sh2 = bn_fold(256)

    bf16 = jnp.bfloat16
    return dict(
        proj=proj.astype(bf16),                           # (384, 3072), zero-padded rows
        watt=watt.astype(bf16),                           # (3072, 1)
        w1=(w1 * s1).astype(bf16), c1=(b1 * s1 + sh1),    # BN folded into W / bias
        w2=(w2 * s2).astype(bf16), c2=(b2 * s2 + sh2),
        w3=w3.astype(bf16), b3=b3,
        w4=w4.astype(bf16), b4=b4)


def audio_model_forward(x, params, *, tile_t=256, fold_backbone=True):
    """x: float32 waveform [B, L].  Returns logits [B, num_classes]."""
    B, L = x.shape
    T = L // FRAME
    if T < 1:
        raise ValueError(f"waveform too short: need >= {FRAME} samples, got {L}")
    num_classes = params["w4"].shape[1]

    # Time tile: multiple of 16 (bf16 sublane packing), 128/256 fills the MXU M-dim; ragged T is
    # handled by zero-padding + in-kernel masking (no whole-sequence fallback -> bounded VMEM).
    tile_t = _round_up(max(tile_t, 16), 16)
    tT = min(tile_t, _round_up(T, 16))
    T_pad = _round_up(T, tT)

    frames = x[:, :T * FRAME].reshape(B, T, FRAME)
    frames = jnp.pad(frames, ((0, 0), (0, T_pad - T), (0, FRAME_PAD - FRAME)))
    frames = frames.astype(jnp.bfloat16)

    proj = params["proj"]                                  # (384, 3072) bf16
    watt = params["watt"]                                  # (3072, 1)  bf16
    # Fold the attention projection through the linear stand-in backbone (valid only while the
    # backbone is a pure linear map): logits = frames @ (proj @ watt).
    a_vec = jnp.dot(proj.astype(jnp.float32),
                    watt.astype(jnp.float32)).astype(jnp.bfloat16)   # (384, 1)

    grid = (B, T_pad // tT)
    stream_cparams = pltpu.CompilerParams(
        dimension_semantics=("parallel", "arbitrary"),
        vmem_limit_bytes=32 * 1024 * 1024)
    head_cparams = pltpu.CompilerParams(vmem_limit_bytes=32 * 1024 * 1024)

    if fold_backbone:
        # Streaming pass: tiny per-tile work (one (tT,384)x(384,1) matvec + VPU softmax update).
        pooled3d = pl.pallas_call(
            functools.partial(pool_frames_kernel, seq_len=T, tile_t=tT),
            out_shape=jax.ShapeDtypeStruct((B, 1, FRAME_PAD), jnp.float32),
            grid_spec=pltpu.PrefetchScalarGridSpec(
                num_scalar_prefetch=0,
                grid=grid,
                in_specs=[pl.BlockSpec((1, tT, FRAME_PAD), lambda b, t: (b, t, 0)),
                          pl.BlockSpec((FRAME_PAD, 1), lambda b, t: (0, 0))],
                out_specs=pl.BlockSpec((1, 1, FRAME_PAD), lambda b, t: (b, 0, 0)),
                scratch_shapes=[pltpu.VMEM((1, 1), jnp.float32),          # running max m
                                pltpu.VMEM((1, 1), jnp.float32),          # running denom l
                                pltpu.VMEM((1, FRAME_PAD), jnp.float32)]),  # weighted frame sum
            compiler_params=stream_cparams,
        )(frames, a_vec)
        pooled_frames = pooled3d[:, 0, :]                                  # (B, 384) f32

        # Batched head: projection + BN-folded MLP, one call for the whole batch.
        return pl.pallas_call(
            classifier_from_frames_kernel,
            out_shape=jax.ShapeDtypeStruct((B, num_classes), jnp.float32),
            compiler_params=head_cparams,
        )(pooled_frames, proj, params["w1"], params["c1"], params["w2"], params["c2"],
          params["w3"], params["b3"], params["w4"], params["b4"])

    # Unfused path (kept for when a real non-linear backbone replaces the projection stand-in).
    pooled3d = pl.pallas_call(
        functools.partial(pool_feats_kernel, seq_len=T, tile_t=tT),
        out_shape=jax.ShapeDtypeStruct((B, 1, D_CAT), jnp.float32),
        grid_spec=pltpu.PrefetchScalarGridSpec(
            num_scalar_prefetch=0,
            grid=grid,
            in_specs=[pl.BlockSpec((1, tT, FRAME_PAD), lambda b, t: (b, t, 0)),
                      pl.BlockSpec((FRAME_PAD, D_CAT), lambda b, t: (0, 0)),
                      pl.BlockSpec((FRAME_PAD, 1), lambda b, t: (0, 0))],
            out_specs=pl.BlockSpec((1, 1, D_CAT), lambda b, t: (b, 0, 0)),
            scratch_shapes=[pltpu.VMEM((1, 1), jnp.float32),
                            pltpu.VMEM((1, 1), jnp.float32),
                            pltpu.VMEM((1, D_CAT), jnp.float32)]),
        compiler_params=stream_cparams,
    )(frames, proj, a_vec)
    pooled_feats = pooled3d[:, 0, :]                                       # (B, 3072) f32

    return pl.pallas_call(
        classifier_kernel,
        out_shape=jax.ShapeDtypeStruct((B, num_classes), jnp.float32),
        compiler_params=head_cparams,
    )(pooled_feats, params["w1"], params["c1"], params["w2"], params["c2"],
      params["w3"], params["b3"], params["w4"], params["b4"])


def reference_forward(x, params):
    """Pure-JAX f32 reference of the stand-in model (for correctness checking)."""
    B, L = x.shape
    T = L // FRAME
    frames = x[:, :T * FRAME].reshape(B, T, FRAME).astype(jnp.float32)
    proj = params["proj"].astype(jnp.float32)[:FRAME]
    watt = params["watt"].astype(jnp.float32)
    feats = jnp.einsum("btf,fd->btd", frames, proj)            # (B, T, 3072)
    att = jnp.einsum("btd,do->bto", feats, watt)               # (B, T, 1)
    w = jax.nn.softmax(att, axis=1)
    pooled = jnp.sum(feats * w, axis=1)                        # (B, 3072)
    h = jnp.maximum(pooled @ params["w1"].astype(jnp.float32) + params["c1"], 0.0)
    h = jnp.maximum(h @ params["w2"].astype(jnp.float32) + params["c2"], 0.0)
    h = jnp.maximum(h @ params["w3"].astype(jnp.float32) + params["b3"], 0.0)
    return h @ params["w4"].astype(jnp.float32) + params["b4"]


if __name__ == "__main__":
    key = jax.random.PRNGKey(0)
    kx, kp = jax.random.split(key)

    B = 2
    T = 16
    L = FRAME * T                                   # 5120-sample waveform -> T=16 frames
    x = jax.random.normal(kx, (B, L), jnp.float32)
    params = make_params(kp, NUM_CLASSES)

    out = audio_model_forward(x, params, tile_t=256, fold_backbone=True)
    out = jax.block_until_ready(out)
    assert out.shape == (B, NUM_CLASSES) and out.dtype == jnp.float32
    assert bool(jnp.all(jnp.isfinite(out)))

    # Cross-check the folded fast path and the unfused path against a pure-JAX f32 reference.
    out_unfused = jax.block_until_ready(
        audio_model_forward(x, params, tile_t=256, fold_backbone=False))
    ref = reference_forward(x, params)
    assert bool(jnp.allclose(out, ref, rtol=5e-2, atol=5e-2))
    assert bool(jnp.allclose(out_unfused, ref, rtol=5e-2, atol=5e-2))

    print("KERNEL_OK")
</pallas_src>

<mosaic_0001>
module attributes {stable_mosaic.version = 11 : i64} {
  func.func @pool_frames_kernel(%arg0: i32, %arg1: i32, %arg2: memref<1x16x384xbf16, #tpu.memory_space<vmem>>, %arg3: memref<384x1xbf16, #tpu.memory_space<vmem>>, %arg4: memref<1x1x384xf32, #tpu.memory_space<vmem>>, %arg5: memref<1x1xf32, #tpu.memory_space<vmem>>, %arg6: memref<1x1xf32, #tpu.memory_space<vmem>>, %arg7: memref<1x384xf32, #tpu.memory_space<vmem>>) attributes {dimension_semantics = [#tpu.dimension_semantics<parallel>, #tpu.dimension_semantics<arbitrary>], iteration_bounds = array<i64: 2, 1>, scalar_prefetch = 0 : i64, scratch_operands = 3 : i64, tpu.core_type = #tpu.core_type<tc>, window_params = [{transform_indices = @transform_0, window_bounds = array<i64: 1, 16, 384>}, {pipeline_mode = #tpu.pipeline_mode<synchronous>, transform_indices = @transform_1, window_bounds = array<i64: 384, 1>}, {transform_indices = @transform_2, window_bounds = array<i64: 1, 1, 384>}]} {
    %c0_i32 = arith.constant 0 : i32
    %0 = arith.cmpi eq, %arg1, %c0_i32 : i32
    %1 = arith.extui %0 : i1 to i32
    %c0_i32_0 = arith.constant 0 : i32
    %2 = arith.cmpi ne, %1, %c0_i32_0 : i32
    scf.if %2 {
      %cst_26 = arith.constant 0xFF800000 : f32
      %42 = vector.broadcast %cst_26 : f32 to vector<1x1xf32>
      %c0_27 = arith.constant 0 : index
      %c0_28 = arith.constant 0 : index
      %43 = vector.load %arg5[%c0_27, %c0_28] : memref<1x1xf32, #tpu.memory_space<vmem>>, vector<1x1xf32>
      tpu.vector_store %arg5[%c0_27, %c0_28], %42 {strides = array<i32>} : memref<1x1xf32, #tpu.memory_space<vmem>>, vector<1x1xf32>,
      %cst_29 = arith.constant 0.000000e+00 : f32
      %44 = vector.broadcast %cst_29 : f32 to vector<1x1xf32>
      %c0_30 = arith.constant 0 : index
      %c0_31 = arith.constant 0 : index
      %45 = vector.load %arg6[%c0_30, %c0_31] : memref<1x1xf32, #tpu.memory_space<vmem>>, vector<1x1xf32>
      tpu.vector_store %arg6[%c0_30, %c0_31], %44 {strides = array<i32>} : memref<1x1xf32, #tpu.memory_space<vmem>>, vector<1x1xf32>,
      %cst_32 = arith.constant 0.000000e+00 : f32
      %46 = vector.broadcast %cst_32 : f32 to vector<1x384xf32>
      %c0_33 = arith.constant 0 : index
      %c0_34 = arith.constant 0 : index
      %47 = vector.load %arg7[%c0_33, %c0_34] : memref<1x384xf32, #tpu.memory_space<vmem>>, vector<1x384xf32>
      tpu.vector_store %arg7[%c0_33, %c0_34], %46 {strides = array<i32>} : memref<1x384xf32, #tpu.memory_space<vmem>>, vector<1x384xf32>,
    } else {
    }
    %c0 = arith.constant 0 : index
    %c0_1 = arith.constant 0 : index
    %c0_2 = arith.constant 0 : index
    %3 = vector.load %arg2[%c0, %c0_1, %c0_2] : memref<1x16x384xbf16, #tpu.memory_space<vmem>>, vector<1x16x384xbf16>
    %4 = vector.shape_cast %3 : vector<1x16x384xbf16> to vector<16x384xbf16>
    %c0_3 = arith.constant 0 : index
    %c0_4 = arith.constant 0 : index
    %5 = vector.load %arg3[%c0_3, %c0_4] : memref<384x1xbf16, #tpu.memory_space<vmem>>, vector<384x1xbf16>
    %cst = arith.constant dense<0.000000e+00> : vector<16x1xf32>
    %6 = tpu.matmul %4, %5, %cst {dimension_numbers = #tpu.dot_dimension_numbers<[1], [0], [0], [1], [0, 0, 1, 1], [], []>} : vector<16x384xbf16>, vector<384x1xbf16>, vector<16x1xf32> -> vector<16x1xf32>
    %7 = tpu.iota {dimensions = array<i32: 0>} : vector<16x1xi32>
    %c16_i32 = arith.constant 16 : i32
    %8 = arith.muli %arg1, %c16_i32 : i32
    %9 = vector.broadcast %8 : i32 to vector<16x1xi32>
    %10 = arith.addi %7, %9 : vector<16x1xi32>
    %c16_i32_5 = arith.constant 16 : i32
    %11 = vector.broadcast %c16_i32_5 : i32 to vector<16x1xi32>
    %12 = arith.cmpi slt, %10, %11 : vector<16x1xi32>
    %cst_6 = arith.constant 0xFF800000 : f32
    %13 = vector.broadcast %cst_6 : f32 to vector<16x1xf32>
    %14 = arith.select %12, %6, %13 : vector<16x1xi1>, vector<16x1xf32>
    %cst_7 = arith.constant dense<0xFF800000> : vector<1xf32>
    %15 = vector.multi_reduction <maximumf>, %14, %cst_7 [0] : vector<16x1xf32> to vector<1xf32>
    %16 = vector.shape_cast %15 : vector<1xf32> to vector<1x1xf32>
    %c0_8 = arith.constant 0 : index
    %c0_9 = arith.constant 0 : index
    %17 = vector.load %arg5[%c0_8, %c0_9] : memref<1x1xf32, #tpu.memory_space<vmem>>, vector<1x1xf32>
    %18 = arith.maximumf %17, %16 : vector<1x1xf32>
    %c0_10 = arith.constant 0 : index
    %c0_11 = arith.constant 0 : index
    %19 = vector.load %arg5[%c0_10, %c0_11] : memref<1x1xf32, #tpu.memory_space<vmem>>, vector<1x1xf32>
    %20 = arith.subf %19, %18 : vector<1x1xf32>
    %21 = math.exp %20 : vector<1x1xf32>
    %22 = vector.broadcast %18 : vector<1x1xf32> to vector<16x1xf32>
    %23 = arith.subf %14, %22 : vector<16x1xf32>
    %24 = math.exp %23 : vector<16x1xf32>
    %c0_12 = arith.constant 0 : index
    %c0_13 = arith.constant 0 : index
    %25 = vector.load %arg6[%c0_12, %c0_13] : memref<1x1xf32, #tpu.memory_space<vmem>>, vector<1x1xf32>
    %26 = arith.mulf %21, %25 : vector<1x1xf32>
    %cst_14 = arith.constant dense<0.000000e+00> : vector<1xf32>
    %27 = vector.multi_reduction <add>, %24, %cst_14 [0] : vector<16x1xf32> to vector<1xf32>
    %28 = vector.shape_cast %27 : vector<1xf32> to vector<1x1xf32>
    %29 = arith.addf %26, %28 : vector<1x1xf32>
    %c0_15 = arith.constant 0 : index
    %c0_16 = arith.constant 0 : index
    %30 = vector.load %arg6[%c0_15, %c0_16] : memref<1x1xf32, #tpu.memory_space<vmem>>, vector<1x1xf32>
    tpu.vector_store %arg6[%c0_15, %c0_16], %29 {strides = array<i32>} : memref<1x1xf32, #tpu.memory_space<vmem>>, vector<1x1xf32>,
    %31 = arith.truncf %24 : vector<16x1xf32> to vector<16x1xbf16>
    %cst_17 = arith.constant dense<0.000000e+00> : vector<1x384xf32>
    %32 = tpu.matmul %31, %4, %cst_17 {dimension_numbers = #tpu.dot_dimension_numbers<[0], [0], [1], [1], [0, 1, 1, 1], [], []>} : vector<16x1xbf16>, vector<16x384xbf16>, vector<1x384xf32> -> vector<1x384xf32>
    %c0_18 = arith.constant 0 : index
    %c0_19 = arith.constant 0 : index
    %33 = vector.load %arg7[%c0_18, %c0_19] : memref<1x384xf32, #tpu.memory_space<vmem>>, vector<1x384xf32>
    %34 = vector.broadcast %21 : vector<1x1xf32> to vector<1x384xf32>
    %35 = arith.mulf %34, %33 : vector<1x384xf32>
    %36 = arith.addf %35, %32 : vector<1x384xf32>
    %c0_20 = arith.constant 0 : index
    %c0_21 = arith.constant 0 : index
    %37 = vector.load %arg7[%c0_20, %c0_21] : memref<1x384xf32, #tpu.memory_space<vmem>>, vector<1x384xf32>
    tpu.vector_store %arg7[%c0_20, %c0_21], %36 {strides = array<i32>} : memref<1x384xf32, #tpu.memory_space<vmem>>, vector<1x384xf32>,
    %c0_22 = arith.constant 0 : index
    %c0_23 = arith.constant 0 : index
    %38 = vector.load %arg5[%c0_22, %c0_23] : memref<1x1xf32, #tpu.memory_space<vmem>>, vector<1x1xf32>
    tpu.vector_store %arg5[%c0_22, %c0_23], %18 {strides = array<i32>} : memref<1x1xf32, #tpu.memory_space<vmem>>, vector<1x1xf32>,
    %c0_i32_24 = arith.constant 0 : i32
    %39 = arith.cmpi eq, %arg1, %c0_i32_24 : i32
    %40 = arith.extui %39 : i1 to i32
    %c0_i32_25 = arith.constant 0 : i32
    %41 = arith.cmpi ne, %40, %c0_i32_25 : i32
    scf.if %41 {
      %c0_26 = arith.constant 0 : index
      %c0_27 = arith.constant 0 : index
      %42 = vector.load %arg7[%c0_26, %c0_27] : memref<1x384xf32, #tpu.memory_space<vmem>>, vector<1x384xf32>
      %c0_28 = arith.constant 0 : index
      %c0_29 = arith.constant 0 : index
      %43 = vector.load %arg6[%c0_28, %c0_29] : memref<1x1xf32, #tpu.memory_space<vmem>>, vector<1x1xf32>
      %44 = vector.broadcast %43 : vector<1x1xf32> to vector<1x384xf32>
      %45 = arith.divf %42, %44 : vector<1x384xf32>
      %c0_30 = arith.constant 0 : index
      %c0_31 = arith.constant 0 : index
      %c0_32 = arith.constant 0 : index
      %46 = vector.load %arg4[%c0_30, %c0_31, %c0_32] : memref<1x1x384xf32, #tpu.memory_space<vmem>>, vector<1x1x384xf32>
      %47 = vector.shape_cast %46 : vector<1x1x384xf32> to vector<1x384xf32>
      %48 = vector.shape_cast %45 : vector<1x384xf32> to vector<1x1x384xf32>
      tpu.vector_store %arg4[%c0_30, %c0_31, %c0_32], %48 {strides = array<i32>} : memref<1x1x384xf32, #tpu.memory_space<vmem>>, vector<1x1x384xf32>,
    } else {
    }
    return
  }
  func.func @transform_0(%arg0: i32, %arg1: i32) -> (i32, i32, i32) {
    %c0_i32 = arith.constant 0 : i32
    %c0_i32_0 = arith.constant 0 : i32
    return %arg0, %arg1, %c0_i32 : i32, i32, i32
  }
  func.func @transform_1(%arg0: i32, %arg1: i32) -> (i32, i32) {
    %c0_i32 = arith.constant 0 : i32
    %c0_i32_0 = arith.constant 0 : i32
    %c0_i32_1 = arith.constant 0 : i32
    return %c0_i32, %c0_i32_0 : i32, i32
  }
  func.func @transform_2(%arg0: i32, %arg1: i32) -> (i32, i32, i32) {
    %c0_i32 = arith.constant 0 : i32
    %c0_i32_0 = arith.constant 0 : i32
    %c0_i32_1 = arith.constant 0 : i32
    return %arg0, %c0_i32, %c0_i32_0 : i32, i32, i32
  }
}

</mosaic_0001>

<bundles_post_ra>
// kernel: tpu_custom_call.1
= control target key start
LH: loop header
LB: loop body
LE: loop exit
PB: predicated region body
PF: predicated region fallthrough
CT: control target
= control target key end

     0   :  { %7 = vsyncpa [#allocation6], 0  ;;  %s1211_s0 = inlined_call_operand.vmem [shape: bf16[2,16,384], index: 0, kind: input, shape index: {}]   ;;  %s1212_s1 = inlined_call_operand.vmem [shape: bf16[384,1], index: 1, kind: input, shape index: {}]   ;;  %s1213_s2 = inlined_call_operand.hbm [shape: f32[2,1,384], index: 2, kind: output, shape index: {}]  }
   0x1   :  { %9 = vsyncpa [#allocation6 + $0x1], 0  ;;  %s1008_s9 = smov 0   ;;  %s1010_s10 = smov 0  }
   0x2   :  { %s1012_s11 = smov 0   ;;  %s1014_s12 = smov 0  }
   0x3   :  { %s1016_s13 = smov 0   ;;  %s1018_s14 = smov 0  }
   0x4 LB: > { %s693_s15 = sadd.s32 4294967295, %s988_s14   ;;  %s694_s16 = sadd.s32 4294967294, %s988_s14   ;;  %s988_s14 = sphi %s1018_s14, %s15_s14   ;;  %s984_s13 = sphi %s1016_s13, %s1222_s13   ;;  %s980_s12 = sphi %s1014_s12, %s1221_s12   ;;  %s976_s11 = sphi %s1012_s11, %s1220_s11   ;;  %s972_s10 = sphi %s1010_s10, %s1219_s10   ;;  %s968_s9 = sphi %s1008_s9, %s1218_s9  }
   0x5   : > { %s27_s17 = sadd.s32 1, %s984_s13  ;;  %s83_s18 = sadd.s32 1, %s976_s11 }
   0x6   : > { %p29_p0 = scmp.ge.s32.totalorder %s27_s17, 2  ;;  %p93_p1 = scmp.ne.s32.totalorder %s976_s11, %s972_s10 }
   0x7   : > { %p94_p2 = scmp.eq.s32.totalorder %s693_s15, 1  ;;  %p99_p3 = scmp.ne.s32.totalorder %s972_s10, %s968_s9 }
   0x8   : > { %s1224_s17 = smov (%p29_p0, %s27_s17), 0  ;;  %p100_p5 = scmp.eq.s32.totalorder %s694_s16, 1 }
   0x9   : > { %p1048_p4 = por %p94_p2, %p93_p1  ;;  %s80_s20 = ssub.s32 %s984_s13, %s1224_s17 }
   0xa   : > { %p697_p6 = scmp.ge.s32.totalorder %s988_s14, 1  ;;  %p81_p7 = scmp.eq.s32.totalorder %s80_s20, 0 }
   0xb   : > { %p1055_p8 = por %p100_p5, %p99_p3  ;;  %p135_p9 = scmp.lt.s32.totalorder %s988_s14, 3 }
   0xc   : > { %s1061_s22 = scalar_select %p81_p7, %s976_s11, %s83_s18  }
   0xd   : > { %p136_p10 = pnand %p697_p6, %p135_p9 }
   0xe   : > { %p163_p11 = scmp.lt.s32.totalorder (!%p136_p10), %s980_s12, 1  ;;  %s841_s24 = smul.u32 (!%p136_p10), 3, %s980_s12 }
   0xf   : > { %139 = sbr.rel (%p136_p10) target bundleno = 584 (0x248), region = 28 }
  0x10   : > { %s612_s28 = scalar_lea.hbm (!%p136_p10), %s1213_s2, %s841_s24 }
  0x11   : > { %s616_s30 = sshll.u32 (!%p136_p10), %s612_s28, 4  ;;  %s617_s30 = int_to_ptr.hbm [resolvable:$true] %s616_s30 }
  0x12   : > { %s924_s4 = sshra.s32 (!%p136_p10), %s617_s30, 4  ;;  %s925_s4 = int_to_ptr.hbm [resolvable:$true] %s924_s4 }
  0x13   : > { %p931_p1 = scmp.lt.s32.totalorder (!%p136_p10), %s925_s4, %s1213_s2 }
  0x14   : > { %v822_v0 = vld [vmem:[%s1212_s1 + $0x38] sm:$0xff]  ;;  %v821_v3 = vld [vmem:[%s1212_s1 + $0x30] sm:$0xff]  ;;  %s164_s5 = scalar_select %p163_p11, %s980_s12, 1  ;;  %v820_v6 = vld [vmem:[%s1212_s1 + $0x28] sm:$0xff]  ;;  %vm178_vm0 = vcmask 0   ;;  %v990_v33 = vmov -inf  }
  0x15   : > { %v830_v1 = vld [vmem:[%s1212_s1 + $0x78] sm:$0xff]  ;;  %398 = vmatpush.bf16.msra.mxu0 %v822_v0  ;;  %v829_v4 = vld [vmem:[%s1212_s1 + $0x70] sm:$0xff]  ;;  %v828_v7 = vld [vmem:[%s1212_s1 + $0x68] sm:$0xff]  ;;  %179 = vst.msk [vmem:[#allocation2] sm:$0x1] %vm178_vm0, %v990_v33  ;;  %v991_v34 = vmov 0.0  }
  0x16   : > { %v838_v2 = vld [vmem:[%s1212_s1 + $0xb8] sm:$0xff]  ;;  %412 = vmatpush.bf16.msra.mxu1 %v830_v1  ;;  %v837_v5 = vld [vmem:[%s1212_s1 + $0xb0] sm:$0xff]  ;;  %s840_s8 = smul.u32 24, %s164_s5  ;;  %v836_v8 = vld [vmem:[%s1212_s1 + $0xa8] sm:$0xff]  ;;  %180 = vst.msk [vmem:[#allocation3] sm:$0x1] %vm178_vm0, %v991_v34 }
  0x17   : > { %426 = vmatpush.bf16.msra.mxu2 %v838_v2  ;;  %v819_v14 = vld [vmem:[%s1212_s1 + $0x20] sm:$0xff]  ;;  %v818_v18 = vld [vmem:[%s1212_s1 + $0x18] sm:$0xff]  ;;  %v817_v21 = vld [vmem:[%s1212_s1 + $0x10] sm:$0xff]  ;;  %v992_v41 = vmov 0   ;;  %vm451_vm1 = vcmask 7168   ;;  %vm506_vm3 = vcmask 130048  }
  0x18   : > { %s1092_s25 = scalar_lea.vmem %s1211_s0, %s840_s8  ;;  %v827_v15 = vld [vmem:[%s1212_s1 + $0x60] sm:$0xff]  ;;  %v826_v19 = vld [vmem:[%s1212_s1 + $0x58] sm:$0xff]  ;;  %v825_v22 = vld [vmem:[%s1212_s1 + $0x50] sm:$0xff]  ;;  %901 = vset.pattern.permute.xlu1 %v992_v41  ;;  %vm562_vm4 = vcmask 1040384   ;;  %vm564_vm5 = vcmask 1041408   ;;  %s926_s5 = scalar_lea.hbm %s925_s4, 3 }
  0x19   : > { %399 = vmatpush.bf16.msra.mxu0 %v821_v3  ;;  %v701_v9 = vld [vmem:[%s1092_s25] sm:$0xf]  ;;  %v813_v10 = vld [vmem:[%s1092_s25 + $0x8] sm:$0xf0]  ;;  %v812_v11 = vld [vmem:[%s1092_s25 + $0x4] sm:$0xf]  ;;  %p927_p12 = scmp.ne.s32.totalorder %s925_s4, %s926_s5 }
  0x1a   : > { %413 = vmatpush.bf16.msra.mxu1 %v829_v4  ;;  %v702_v12 = vor.u32 %v813_v10, %v701_v9  ;;  %v703_v13 = vld [vmem:[%s1092_s25 + $0xc] sm:$0xf0]  ;;  %v835_v17 = vld [vmem:[%s1212_s1 + $0xa0] sm:$0xff]  ;;  %v834_v20 = vld [vmem:[%s1212_s1 + $0x98] sm:$0xff]  ;;  %s930_s8 = scalar_lea.hbm %s1213_s2, 6 }
  0x1b   : > { %427 = vmatpush.bf16.msra.mxu2 %v837_v5  ;;  %v706_v16 = vor.u32 %v812_v11, %v703_v13  ;;  %v833_v23 = vld [vmem:[%s1212_s1 + $0x90] sm:$0xff]  ;;  %v816_v24 = vld [vmem:[%s1212_s1 + $0x8] sm:$0xff]  ;;  %v815_v27 = vld [vmem:[%s1212_s1] sm:$0xff]  ;;  %p928_p13 = pnand %p927_p12, %p1048_p4  ;;  %p932_p2 = scmp.lt.s32.totalorder %s930_s8, %s926_s5 }
  0x1c   : > { %517 = vmatpush.bf16.msra.mxu3 %v702_v12  ;;  %v824_v25 = vld [vmem:[%s1212_s1 + $0x48] sm:$0xff]  ;;  %v823_v28 = vld [vmem:[%s1212_s1 + $0x40] sm:$0xff]  ;;  %v814_v31 = vld [vmem:[%s1092_s25 + $0x10] sm:$0xf0] }
  0x1d   : > { %400 = vmatpush.bf16.msra.mxu0 %v820_v6  ;;  %v832_v26 = vld [vmem:[%s1212_s1 + $0x88] sm:$0xff]  ;;  %v831_v29 = vld [vmem:[%s1212_s1 + $0x80] sm:$0xff]  ;;  %p929_p0 = pneg %p928_p13  ;;  %p933_p3 = por %p932_p2, %p931_p1 }
  0x1e   : > { %414 = vmatpush.bf16.msra.mxu1 %v828_v7  ;;  %v709_v30 = vld [vmem:[%s1092_s25 + $0x8] sm:$0xf]  ;;  %v461_v54 = vld [vmem:[#allocation2] sm:$0x1]  ;;  %v475_v11 = vld [vmem:[#allocation3] sm:$0x1] }
  0x1f   : > { %428 = vmatpush.bf16.msra.mxu2 %v836_v8  ;;  %v1148_v32 = vor.u32 %v814_v31, %v709_v30  ;;  %s159_s25 = sand.u32 1, %s972_s10   ;;  %p934_p5 = pnand %p933_p3, %p929_p0 }
  0x20   : > { %530 = vmatpush.bf16.msrb.mxu3 %v706_v16  ;;  %s839_s23 = smul.u32 3, %s159_s25  ;;  %s602_s3 = scalar_lea.sflag [#allocation6], %s159_s25 }
  0x21   : > { %401 = vmatpush.bf16.msra.mxu0 %v819_v14 }
  0x22   : > { %415 = vmatpush.bf16.msra.mxu1 %v827_v15  ;;  %s161_s29 = scalar_lea.vmem [#allocation5], %s839_s23 }
  0x23   : > { %429 = vmatpush.bf16.msra.mxu2 %v835_v17  ;;  %s614_s12 = sshll.u32 %s161_s29, 4  ;;  %s615_s12 = int_to_ptr.vmem [resolvable:$true] %s614_s12 }
  0x25   : > { %402 = vmatpush.bf16.msra.mxu0 %v818_v18 }
  0x26   : > { %416 = vmatpush.bf16.msra.mxu1 %v826_v19 }
  0x27   : > { %430 = vmatpush.bf16.msra.mxu2 %v834_v20 }
  0x29   : > { %403 = vmatpush.bf16.msra.mxu0 %v817_v21 }
  0x2a   : > { %417 = vmatpush.bf16.msra.mxu1 %v825_v22 }
  0x2b   : > { %431 = vmatpush.bf16.msra.mxu2 %v833_v23 }
  0x2d   : > { %404 = vmatpush.bf16.msra.mxu0 %v816_v24 }
  0x2e   : > { %418 = vmatpush.bf16.msra.mxu1 %v824_v25 }
  0x2f   : > { %432 = vmatpush.bf16.msra.mxu2 %v832_v26 }
  0x31   : > { %405 = vmatpush.bf16.msra.mxu0 %v815_v27 }
  0x32   : > { %419 = vmatpush.bf16.msra.mxu1 %v823_v28 }
  0x33   : > { %433 = vmatpush.bf16.msra.mxu2 %v831_v29 }
  0x34   : > { %406 = vmatmul.bf16.vlgmr.msra.gmra.mxu0 %v702_v12 }
  0x35   : > { %420 = vmatmul.bf16.vlgmr.msra.gmra.mxu1 %v706_v16  ;;  %v181_v16 = vlaneseq }
  0x36   : > { %434 = vmatmul.bf16.vlgmr.msra.gmra.mxu2 %v1148_v32 }
  0x37   : > { %vm1159_vm2 = vcmp.lt.s32.totalorder %v181_v16, 384 }
  0x38   : > { %185 = vst.msk [vmem:[#allocation4] sm:$0x7] %vm1159_vm2, %v991_v34 }
  0x3f   : > { %v549_v33 = vld [vmem:[#allocation4] sm:$0x7] }
  0xb1   : > { %v407_v35 = vpop.f32.mrf.mxu0 }
  0xb2   : > { %v421_v36 = vpop.f32.mrf.mxu1 }
  0xb3   : > { %v422_v38 = vadd.f32 %v421_v36, %v407_v35 }
  0xb9   : > { %v435_v37 = vpop.f32.mrf.mxu2  ;;  %v409_v39 = vpop.f32.mrf.mxu0 }
  0xba   : > { %v423_v40 = vpop.f32.mrf.mxu1  ;;  %v436_v42 = vadd.f32 %v435_v37, %v422_v38 }
  0xbb   : > { %v424_v43 = vadd.f32 %v423_v40, %v409_v39 }
  0xbc   : > { %v452_v46 = vsel %vm451_vm1, %v436_v42, -inf }
  0xc1   : > { %v437_v44 = vpop.f32.mrf.mxu2 }
  0xc2   : > { %v438_v45 = vadd.f32 %v437_v44, %v424_v43 }
  0xc4   : > { %v453_v47 = vsel %vm451_vm1, %v438_v45, -inf }
  0xc5   : > { %v454_v48 = vmax.f32 %v452_v46, %v453_v47 }
  0xc7   : > { %v455_v49 = vrot.slane %v454_v48, 4 }
  0xc9   : > { %v456_v50 = vmax.f32 %v454_v48, %v455_v49 }
  0xcb   : > { %v457_v51 = vrot.slane %v456_v50, 2 }
  0xcd   : > { %v458_v52 = vmax.f32 %v456_v50, %v457_v51 }
  0xcf   : > { %v459_v53 = vrot.slane %v458_v52, 1 }
  0xd1   : > { %v460_v55 = vmax.f32 %v458_v52, %v459_v53 }
  0xd3   : > { %v462_v56 = vmax.f32 %v461_v54, %v460_v55 }
  0xd5   : > { %v467_v57 = vperm.slane %v462_v56, 0  ;;  %573 = vst.msk [vmem:[#allocation2] sm:$0x1] %vm178_vm0, %v462_v56  ;;  %v463_v58 = vsub.f32 %v461_v54, %v462_v56 }
  0xd7   : > { %v469_v59 = vsub.f32 %v436_v42, %v467_v57  ;;  %v470_v60 = vsub.f32 %v438_v45, %v467_v57  ;;  %v464_v61 = vmul.f32 1.442695, %v463_v58 }
  0xd9   : > { %v471_v62 = vmul.f32 1.442695, %v469_v59  ;;  %v473_v63 = vmul.f32 1.442695, %v470_v60  ;;  %902 = vpow2.f32 %v464_v61 }
  0xdb   : > { %904 = vpow2.f32 %v473_v63 }
  0xdc   : > { %906 = vpow2.f32 %v471_v62 }
  0xdf   : > { %v903_v0 = vpop.eup %902 }
  0xe0   : > { %552 = vperm.xlu1 %901, %v903_v0   ;;  %v476_v13 = vmul.f32 %v903_v0, %v475_v11 }
  0xe1   : > { %v905_v1 = vpop.eup %904 }
  0xe2   : > { %v907_v2 = vpop.eup %906  ;;  %v478_v3 = vsel %vm451_vm1, %v905_v1, 0.0 }
  0xe3   : > { %v489_v4 = vpack.c.bf16 %v905_v1, %v907_v2  ;;  %v477_v5 = vsel %vm451_vm1, %v907_v2, 0.0 }
  0xe4   : > { %v479_v6 = vadd.f32 %v478_v3, %v477_v5 }
  0xe5   : > { %490 = vxpose.xlu0.c.b16.start.end [1/1] (short) (narrow) %v489_v4, 16 }
  0xe6   : > { %v480_v7 = vrot.slane %v479_v6, 4 }
  0xe8   : > { %v481_v8 = vadd.f32 %v480_v7, %v479_v6 }
  0xea   : > { %v482_v9 = vrot.slane %v481_v8, 2 }
  0xec   : > { %v483_v10 = vadd.f32 %v482_v9, %v481_v8 }
  0xee   : > { %v484_v12 = vrot.slane %v483_v10, 1 }
  0xf0   : > { %v485_v14 = vadd.f32 %v484_v12, %v483_v10 }
  0xf2   : > { %v486_v15 = vadd.f32 %v485_v14, %v476_v13 }
  0xf4   : > { %488 = vst.msk [vmem:[#allocation3] sm:$0x1] %vm178_vm0, %v486_v15 }
  0xfb   : > { %v578_v18 = vld [vmem:[#allocation3] sm:$0x1] }
 0x14c   : > { %900 = vset.pattern.permute.xlu0 %v992_v41 }
 0x152   : > { %v553_v28 = vpop.permute.xlu1 %552 }
 0x153   : > { %581 = vperm.xlu0 %900, %v578_v18   ;;  %v555_v29 = vperm.slane %v553_v28, 0 }
 0x155   : > { %v556_v35 = vmul.f32 %v555_v29, %v549_v33 }
 0x191   : > { %v498_v19 = vpop.trf.xlu0 }
 0x192   : > { %807 = vmatmul.msk.bf16.vlgmr.msra.gmra.mxu3 %vm506_vm3, %v498_v19 }
 0x193   : > { %543 = vmatpush.bf16.msra.mxu3 %v1148_v32 }
 0x1a2   : > { %808 = vmatmul.msk.bf16.vlgmr.msrb.gmra.mxu3 %vm506_vm3, %v498_v19 }
 0x1b2   : > { %809 = vmatmul.msk.bf16.vlgmr.msra.gmra.mxu3 %vm506_vm3, %v498_v19 }
 0x1c5   : > { %v582_v22 = vpop.permute.xlu0 %581 }
 0x1c6   : > { %v584_v23 = vperm.slane %v582_v22, 0 }
 0x1c8   : > { %908 = vrcp.f32 %v584_v23  ;;  %v596_v41 = vand.u32 2147483648, %v584_v23  ;;  %vm590_vm7 = vweird.f32 %v584_v23  ;;  %v594_v43 = vand.u32 2147483647, %v584_v23 }
 0x1ca   : > { %v597_v45 = vor.u32 1.1754944e-38, %v596_v41  ;;  %vm595_vm9 = vcmp.eq.f32.partialorder %v594_v43, 8.507059e+37 }
 0x1ce   : > { %v909_v25 = vpop.eup %908 }
 0x1cf   : > { %v586_v27 = vmul.f32 %v909_v25, %v584_v23  ;;  %vm591_vm6 = vweird.f32 %v909_v25 }
 0x1d0   : > { %vm592_vm8 = vmor %vm590_vm7, %vm591_vm6 }
 0x1d1   : > { %v587_v30 = vsub.f32 1.0, %v586_v27 }
 0x1d3   : > { %v588_v36 = vmul.f32 %v909_v25, %v587_v30 }
 0x1d5   : > { %v589_v40 = vadd.f32 %v909_v25, %v588_v36 }
 0x1d7   : > { %v593_v44 = vsel %vm592_vm8, %v909_v25, %v589_v40 }
 0x1d8   : > { %v598_v47 = vsel %vm595_vm9, %v597_v45, %v593_v44 }
 0x215   : > { %v519_v20 = vpop.f32.mrf.mxu3 }
 0x21d   : > { %v521_v21 = vpop.f32.mrf.mxu3 }
 0x225   : > { %v532_v24 = vpop.f32.mrf.mxu3 }
 0x226   : > { %v560_v31 = vrot.slane %v532_v24, 7 }
 0x228   : > { %v563_v37 = vsel %vm562_vm4, %v519_v20, %v560_v31 }
 0x22d   : > { %v534_v26 = vpop.f32.mrf.mxu3 }
 0x235   : > { %v545_v32 = vpop.f32.mrf.mxu3 }
 0x236   : > { %v561_v34 = vrot.slane %v545_v32, 6 }
 0x238   : > { %v565_v38 = vsel %vm564_vm5, %v563_v37, %v561_v34 }
 0x239   : > { %v567_v39 = vadd.f32 %v565_v38, %v556_v35 }
 0x23b   : > { %572 = vst.msk [vmem:[#allocation4] sm:$0x7] %vm1159_vm2, %v567_v39 }
 0x23d   : > { %v547_v42 = vpop.f32.mrf.mxu3 }
 0x242   : > { %v577_v46 = vld [vmem:[#allocation4] sm:$0x7] }
 0x243   : > { %v599_v48 = vmul.f32 %v598_v47, %v577_v46 }
 0x245   : > { %600 = vst.msk [vmem:[%s161_s29] sm:$0x7] %vm1159_vm2, %v599_v48 }
 0x246   : > { %937 = shalt.err (!%p934_p5)
}
 0x247   : > { %842 = dma.vmem_to_hbm [thread:$0]  (%p1048_p4), %s615_s12, 48, %s617_s30, %s602_s3  }
 0x248 PF: > { %p848_p6 = scmp.ge.s32.totalorder %s988_s14, 2  ;;  %s628_s18 = sand.u32 1, %s968_s9  }
 0x249   : > { %s629_s20 = scalar_lea.sflag [#allocation6], %s628_s18 }
 0x24a   : > { %p845_p7 = pnand %p848_p6, %p1055_p8 }
 0x24c   : > { %p846_p9 = pneg %p845_p7 }
 0x24e   : > { %963 = dma.done.wait (%p846_p9), %s629_s20, 48  }
 0x24f   : > { %965 = vsyncadd (%p846_p9), %s629_s20, 4294967248  ;;  %s15_s14 = sadd.s32 1, %s988_s14   ;;  %s1218_s9 = smov %s972_s10 }
 0x250   : > { %p12_p10 = scmp.ge.s32.totalorder %s15_s14, 4   ;;  %s1219_s10 = smov %s976_s11 }
 0x251   : > { %s1220_s11 = smov %s1061_s22  ;;  %s1221_s12 = smov %s984_s13 }
 0x252   : > { %s1222_s13 = smov %s1224_s17  ;;  %14 = sbr.rel (!%p12_p10) target bundleno = 4 (0x4), region = 71 }
 0x257   :  { %635 = vsyncpa [#allocation6], 1 }
 0x258   :  { %637 = vsyncpa [#allocation6 + $0x1], 1 }

</bundles_post_ra>
